<compile_context>
chip_gen: v5e
topology: v5e:2x2
jax: 0.10.0
libtpu: 0.0.40
codegen_flags: <defaults>
</compile_context>

<pallas_src>
import functools

import jax
import jax.numpy as jnp
from jax.experimental import pallas as pl
from jax.experimental.pallas import tpu as pltpu


def _round_up(n, m):
    return ((n + m - 1) // m) * m


def _djinn_kernel(*refs, num_layers, compute_dtype):
    """Fused MLP kernel over one batch tile.

    refs = (x_ref, w0_ref, b0_ref, ..., w{L-1}_ref, b{L-1}_ref, out_ref)
    Weights are [in_dim_padded, out_dim_padded] (pre-transposed, compute_dtype);
    biases are [1, out_dim_padded] float32.
    """
    x_ref = refs[0]
    out_ref = refs[-1]

    h = x_ref[...]                                   # [tile_b, in_dim], compute_dtype
    for i in range(num_layers):
        w = refs[1 + 2 * i][...]                     # [in_dim, out_dim], compute_dtype
        b = refs[2 + 2 * i][...]                     # [1, out_dim], float32
        # MXU matmul with f32 accumulation; bias add stays in f32 on the VPU.
        acc = jnp.dot(h, w, preferred_element_type=jnp.float32) + b
        # Hidden layers (PyTorch indices 1 .. L-2): ReLU (+ identity dropout).
        if 1 <= i <= num_layers - 2:
            acc = jnp.maximum(acc, 0.0)
        if i < num_layers - 1:
            h = acc.astype(compute_dtype)            # single cast per layer
        else:
            out_ref[...] = acc.astype(out_ref.dtype)  # lane-dense (padded) store


def djinn_forward(x, weights, biases, *, tile_b=256, compute_dtype=jnp.bfloat16):
    """Runs the whole PyDJINN forward in one batched pallas_call."""
    batch, input_dim = x.shape
    num_layers = len(weights)
    out_dim = weights[-1].shape[0]

    # Pad every layer's output width to a multiple of 128 -> lane-dense
    # activations throughout and an unmasked final store.
    padded_dims = [_round_up(w.shape[0], 128) for w in weights]
    padded_out = padded_dims[-1]

    # Sublane granularity for the batch tile (bf16 packs 16 rows per vreg).
    sub = 8 * max(1, 4 // jnp.dtype(compute_dtype).itemsize)
    tile_b = _round_up(max(sub, min(tile_b, _round_up(batch, sub))), sub)
    padded_batch = _round_up(batch, tile_b)
    grid = (padded_batch // tile_b,)

    x_p = x
    if padded_batch != batch:
        x_p = jnp.pad(x, ((0, padded_batch - batch), (0, 0)))
    x_p = x_p.astype(compute_dtype)                  # cast activations once

    args = [x_p]
    in_specs = [pl.BlockSpec((tile_b, input_dim), lambda i: (i, 0))]
    prev_real, prev_padded = input_dim, input_dim
    for li, (w, b) in enumerate(zip(weights, biases)):
        real_out = w.shape[0]
        pad_out = padded_dims[li]
        wt = jnp.asarray(w, jnp.float32).T           # [in_dim, out_dim] (MXU RHS)
        bb = jnp.asarray(b, jnp.float32).reshape(1, -1)
        # Zero-pad K (to previous layer's padded width) and N (to this layer's
        # padded width); padded bias entries are zero, so real outputs are
        # unchanged and padded activations stay exactly zero.
        wt = jnp.pad(wt, ((0, prev_padded - prev_real), (0, pad_out - real_out)))
        bb = jnp.pad(bb, ((0, 0), (0, pad_out - real_out)))
        wt = wt.astype(compute_dtype)
        args += [wt, bb]
        # Constant index maps: weights/biases stay resident in VMEM across grid
        # steps (block index never changes -> no re-DMA).
        in_specs += [pl.BlockSpec(wt.shape, lambda i: (0, 0)),
                     pl.BlockSpec(bb.shape, lambda i: (0, 0))]
        prev_real, prev_padded = real_out, pad_out

    kernel = functools.partial(_djinn_kernel, num_layers=num_layers,
                               compute_dtype=compute_dtype)

    y = pl.pallas_call(
        kernel,
        out_shape=jax.ShapeDtypeStruct((padded_batch, padded_out), jnp.float32),
        grid=grid,
        in_specs=in_specs,
        out_specs=pl.BlockSpec((tile_b, padded_out), lambda i: (i, 0)),
        compiler_params=pltpu.CompilerParams(
            dimension_semantics=("parallel",),        # megacore sharding on v7x
            vmem_limit_bytes=32 * 1024 * 1024,        # safe on v7x's 64 MiB VMEM
        ),
    )(*args)

    return y[:batch, :out_dim]


def _reference_forward(x, weights, biases, compute_dtype=jnp.float32):
    """Pure-JAX reference mirroring the PyTorch module (eval mode)."""
    num_layers = len(weights)
    h = x.astype(compute_dtype)
    for i in range(num_layers):
        acc = jnp.dot(h, weights[i].T.astype(compute_dtype),
                      preferred_element_type=jnp.float32) + biases[i].astype(jnp.float32)
        if 1 <= i <= num_layers - 2:
            acc = jnp.maximum(acc, 0.0)
        h = acc.astype(compute_dtype) if i < num_layers - 1 else acc
    return h


if __name__ == "__main__":
    key = jax.random.PRNGKey(0)

    # MLP 32 -> 64 -> 64 -> 64 -> 8. Batch chosen so the grid has multiple
    # batch tiles (with one partially padded tile) at tile_b=16.
    batch = 40
    input_dim = 32
    layer_out_dims = [64, 64, 64, 8]   # rows of weights[0..L-1]

    weights, biases = [], []
    in_dim = input_dim
    for out_dim in layer_out_dims:
        key, kw, kb = jax.random.split(key, 3)
        # Deterministic synthetic "tree-derived" weights + default-style biases.
        weights.append(jax.random.normal(kw, (out_dim, in_dim), jnp.float32) * 0.1)
        biases.append(jax.random.uniform(kb, (out_dim,), jnp.float32,
                                         minval=-0.05, maxval=0.05))
        in_dim = out_dim

    key, kx = jax.random.split(key)
    x = jax.random.normal(kx, (batch, input_dim), jnp.float32)

    y = jax.block_until_ready(djinn_forward(x, weights, biases, tile_b=16))
    assert y.shape == (batch, layer_out_dims[-1])

    # Matched-precision reference (same bf16-operand / f32-accumulate path).
    y_ref_bf16 = _reference_forward(x, weights, biases, compute_dtype=jnp.bfloat16)
    assert jnp.allclose(y, y_ref_bf16, atol=2e-3, rtol=2e-3), \
        "mismatch vs matched-precision reference"

    # Loose sanity check against the full-f32 PyTorch-style reference.
    y_ref_f32 = _reference_forward(x, weights, biases, compute_dtype=jnp.float32)
    assert jnp.allclose(y, y_ref_f32, atol=1e-1, rtol=1e-1), \
        "mismatch vs f32 reference"

    print("KERNEL_OK")
</pallas_src>

<mosaic_0001>
module attributes {stable_mosaic.version = 11 : i64} {
  func.func @_djinn_kernel(%arg0: i32, %arg1: memref<16x32xbf16, #tpu.memory_space<vmem>>, %arg2: memref<32x128xbf16, #tpu.memory_space<vmem>>, %arg3: memref<1x128xf32, #tpu.memory_space<vmem>>, %arg4: memref<128x128xbf16, #tpu.memory_space<vmem>>, %arg5: memref<1x128xf32, #tpu.memory_space<vmem>>, %arg6: memref<128x128xbf16, #tpu.memory_space<vmem>>, %arg7: memref<1x128xf32, #tpu.memory_space<vmem>>, %arg8: memref<128x128xbf16, #tpu.memory_space<vmem>>, %arg9: memref<1x128xf32, #tpu.memory_space<vmem>>, %arg10: memref<16x128xf32, #tpu.memory_space<vmem>>) attributes {dimension_semantics = [#tpu.dimension_semantics<parallel>], iteration_bounds = array<i64: 3>, scalar_prefetch = 0 : i64, scratch_operands = 0 : i64, tpu.core_type = #tpu.core_type<tc>, window_params = [{transform_indices = @transform_0, window_bounds = array<i64: 16, 32>}, {pipeline_mode = #tpu.pipeline_mode<synchronous>, transform_indices = @transform_1, window_bounds = array<i64: 32, 128>}, {pipeline_mode = #tpu.pipeline_mode<synchronous>, transform_indices = @transform_2, window_bounds = array<i64: 1, 128>}, {pipeline_mode = #tpu.pipeline_mode<synchronous>, transform_indices = @transform_3, window_bounds = array<i64: 128, 128>}, {pipeline_mode = #tpu.pipeline_mode<synchronous>, transform_indices = @transform_4, window_bounds = array<i64: 1, 128>}, {pipeline_mode = #tpu.pipeline_mode<synchronous>, transform_indices = @transform_5, window_bounds = array<i64: 128, 128>}, {pipeline_mode = #tpu.pipeline_mode<synchronous>, transform_indices = @transform_6, window_bounds = array<i64: 1, 128>}, {pipeline_mode = #tpu.pipeline_mode<synchronous>, transform_indices = @transform_7, window_bounds = array<i64: 128, 128>}, {pipeline_mode = #tpu.pipeline_mode<synchronous>, transform_indices = @transform_8, window_bounds = array<i64: 1, 128>}, {transform_indices = @transform_9, window_bounds = array<i64: 16, 128>}]} {
    %c0 = arith.constant 0 : index
    %c0_0 = arith.constant 0 : index
    %0 = vector.load %arg1[%c0, %c0_0] : memref<16x32xbf16, #tpu.memory_space<vmem>>, vector<16x32xbf16>
    %c0_1 = arith.constant 0 : index
    %c0_2 = arith.constant 0 : index
    %1 = vector.load %arg2[%c0_1, %c0_2] : memref<32x128xbf16, #tpu.memory_space<vmem>>, vector<32x128xbf16>
    %c0_3 = arith.constant 0 : index
    %c0_4 = arith.constant 0 : index
    %2 = vector.load %arg3[%c0_3, %c0_4] : memref<1x128xf32, #tpu.memory_space<vmem>>, vector<1x128xf32>
    %cst = arith.constant dense<0.000000e+00> : vector<16x128xf32>
    %3 = tpu.matmul %0, %1, %cst {dimension_numbers = #tpu.dot_dimension_numbers<[1], [0], [0], [1], [0, 0, 1, 1], [], []>} : vector<16x32xbf16>, vector<32x128xbf16>, vector<16x128xf32> -> vector<16x128xf32>
    %4 = vector.broadcast %2 : vector<1x128xf32> to vector<16x128xf32>
    %5 = arith.addf %3, %4 : vector<16x128xf32>
    %6 = arith.truncf %5 : vector<16x128xf32> to vector<16x128xbf16>
    %c0_5 = arith.constant 0 : index
    %c0_6 = arith.constant 0 : index
    %7 = vector.load %arg4[%c0_5, %c0_6] : memref<128x128xbf16, #tpu.memory_space<vmem>>, vector<128x128xbf16>
    %c0_7 = arith.constant 0 : index
    %c0_8 = arith.constant 0 : index
    %8 = vector.load %arg5[%c0_7, %c0_8] : memref<1x128xf32, #tpu.memory_space<vmem>>, vector<1x128xf32>
    %cst_9 = arith.constant dense<0.000000e+00> : vector<16x128xf32>
    %9 = tpu.matmul %6, %7, %cst_9 {dimension_numbers = #tpu.dot_dimension_numbers<[1], [0], [0], [1], [0, 0, 1, 1], [], []>} : vector<16x128xbf16>, vector<128x128xbf16>, vector<16x128xf32> -> vector<16x128xf32>
    %10 = vector.broadcast %8 : vector<1x128xf32> to vector<16x128xf32>
    %11 = arith.addf %9, %10 : vector<16x128xf32>
    %cst_10 = arith.constant 0.000000e+00 : f32
    %12 = vector.broadcast %cst_10 : f32 to vector<16x128xf32>
    %13 = arith.maximumf %11, %12 : vector<16x128xf32>
    %14 = arith.truncf %13 : vector<16x128xf32> to vector<16x128xbf16>
    %c0_11 = arith.constant 0 : index
    %c0_12 = arith.constant 0 : index
    %15 = vector.load %arg6[%c0_11, %c0_12] : memref<128x128xbf16, #tpu.memory_space<vmem>>, vector<128x128xbf16>
    %c0_13 = arith.constant 0 : index
    %c0_14 = arith.constant 0 : index
    %16 = vector.load %arg7[%c0_13, %c0_14] : memref<1x128xf32, #tpu.memory_space<vmem>>, vector<1x128xf32>
    %cst_15 = arith.constant dense<0.000000e+00> : vector<16x128xf32>
    %17 = tpu.matmul %14, %15, %cst_15 {dimension_numbers = #tpu.dot_dimension_numbers<[1], [0], [0], [1], [0, 0, 1, 1], [], []>} : vector<16x128xbf16>, vector<128x128xbf16>, vector<16x128xf32> -> vector<16x128xf32>
    %18 = vector.broadcast %16 : vector<1x128xf32> to vector<16x128xf32>
    %19 = arith.addf %17, %18 : vector<16x128xf32>
    %cst_16 = arith.constant 0.000000e+00 : f32
    %20 = vector.broadcast %cst_16 : f32 to vector<16x128xf32>
    %21 = arith.maximumf %19, %20 : vector<16x128xf32>
    %22 = arith.truncf %21 : vector<16x128xf32> to vector<16x128xbf16>
    %c0_17 = arith.constant 0 : index
    %c0_18 = arith.constant 0 : index
    %23 = vector.load %arg8[%c0_17, %c0_18] : memref<128x128xbf16, #tpu.memory_space<vmem>>, vector<128x128xbf16>
    %c0_19 = arith.constant 0 : index
    %c0_20 = arith.constant 0 : index
    %24 = vector.load %arg9[%c0_19, %c0_20] : memref<1x128xf32, #tpu.memory_space<vmem>>, vector<1x128xf32>
    %cst_21 = arith.constant dense<0.000000e+00> : vector<16x128xf32>
    %25 = tpu.matmul %22, %23, %cst_21 {dimension_numbers = #tpu.dot_dimension_numbers<[1], [0], [0], [1], [0, 0, 1, 1], [], []>} : vector<16x128xbf16>, vector<128x128xbf16>, vector<16x128xf32> -> vector<16x128xf32>
    %26 = vector.broadcast %24 : vector<1x128xf32> to vector<16x128xf32>
    %27 = arith.addf %25, %26 : vector<16x128xf32>
    %c0_22 = arith.constant 0 : index
    %c0_23 = arith.constant 0 : index
    %28 = vector.load %arg10[%c0_22, %c0_23] : memref<16x128xf32, #tpu.memory_space<vmem>>, vector<16x128xf32>
    tpu.vector_store %arg10[%c0_22, %c0_23], %27 {strides = array<i32>} : memref<16x128xf32, #tpu.memory_space<vmem>>, vector<16x128xf32>,
    return
  }
  func.func @transform_0(%arg0: i32) -> (i32, i32) {
    %c0_i32 = arith.constant 0 : i32
    %c0_i32_0 = arith.constant 0 : i32
    return %arg0, %c0_i32 : i32, i32
  }
  func.func @transform_1(%arg0: i32) -> (i32, i32) {
    %c0_i32 = arith.constant 0 : i32
    %c0_i32_0 = arith.constant 0 : i32
    %c0_i32_1 = arith.constant 0 : i32
    return %c0_i32, %c0_i32_0 : i32, i32
  }
  func.func @transform_2(%arg0: i32) -> (i32, i32) {
    %c0_i32 = arith.constant 0 : i32
    %c0_i32_0 = arith.constant 0 : i32
    %c0_i32_1 = arith.constant 0 : i32
    return %c0_i32, %c0_i32_0 : i32, i32
  }
  func.func @transform_3(%arg0: i32) -> (i32, i32) {
    %c0_i32 = arith.constant 0 : i32
    %c0_i32_0 = arith.constant 0 : i32
    %c0_i32_1 = arith.constant 0 : i32
    return %c0_i32, %c0_i32_0 : i32, i32
  }
  func.func @transform_4(%arg0: i32) -> (i32, i32) {
    %c0_i32 = arith.constant 0 : i32
    %c0_i32_0 = arith.constant 0 : i32
    %c0_i32_1 = arith.constant 0 : i32
    return %c0_i32, %c0_i32_0 : i32, i32
  }
  func.func @transform_5(%arg0: i32) -> (i32, i32) {
    %c0_i32 = arith.constant 0 : i32
    %c0_i32_0 = arith.constant 0 : i32
    %c0_i32_1 = arith.constant 0 : i32
    return %c0_i32, %c0_i32_0 : i32, i32
  }
  func.func @transform_6(%arg0: i32) -> (i32, i32) {
    %c0_i32 = arith.constant 0 : i32
    %c0_i32_0 = arith.constant 0 : i32
    %c0_i32_1 = arith.constant 0 : i32
    return %c0_i32, %c0_i32_0 : i32, i32
  }
  func.func @transform_7(%arg0: i32) -> (i32, i32) {
    %c0_i32 = arith.constant 0 : i32
    %c0_i32_0 = arith.constant 0 : i32
    %c0_i32_1 = arith.constant 0 : i32
    return %c0_i32, %c0_i32_0 : i32, i32
  }
  func.func @transform_8(%arg0: i32) -> (i32, i32) {
    %c0_i32 = arith.constant 0 : i32
    %c0_i32_0 = arith.constant 0 : i32
    %c0_i32_1 = arith.constant 0 : i32
    return %c0_i32, %c0_i32_0 : i32, i32
  }
  func.func @transform_9(%arg0: i32) -> (i32, i32) {
    %c0_i32 = arith.constant 0 : i32
    %c0_i32_0 = arith.constant 0 : i32
    return %arg0, %c0_i32 : i32, i32
  }
}

</mosaic_0001>

<bundles_post_ra>
// kernel: tpu_custom_call.1
= control target key start
LH: loop header
LB: loop body
LE: loop exit
PB: predicated region body
PF: predicated region fallthrough
CT: control target
= control target key end

     0   :  { %s1386_s0 = inlined_call_operand.vmem [shape: bf16[48,32], index: 0, kind: input, shape index: {}]   ;;  %s1387_s1 = inlined_call_operand.vmem [shape: bf16[32,128], index: 1, kind: input, shape index: {}]   ;;  %s1388_s2 = inlined_call_operand.vmem [shape: f32[1,128], index: 2, kind: input, shape index: {}]   ;;  %s1389_s3 = inlined_call_operand.hbm [shape: bf16[128,128], index: 3, kind: input, shape index: {}]   ;;  %s1390_s4 = inlined_call_operand.vmem [shape: f32[1,128], index: 4, kind: input, shape index: {}]   ;;  %s1391_s5 = inlined_call_operand.hbm [shape: bf16[128,128], index: 5, kind: input, shape index: {}]   ;;  %s1392_s6 = inlined_call_operand.vmem [shape: f32[1,128], index: 6, kind: input, shape index: {}]   ;;  %s1393_s7 = inlined_call_operand.hbm [shape: bf16[128,128], index: 7, kind: input, shape index: {}]   ;;  %s1394_s8 = inlined_call_operand.vmem [shape: f32[1,128], index: 8, kind: input, shape index: {}]   ;;  %s1395_s9 = inlined_call_operand.hbm [shape: f32[48,128], index: 9, kind: output, shape index: {}]  }
   0x1   :  { %1396 = sst [smem:[#allocation13_spill]] %s1389_s3 }
   0x2   :  { %1397 = sst [smem:[#allocation14_spill]] %s1391_s5 }
   0x3   :  { %14 = vsyncpa [#allocation3], 0 }
   0x4   :  { %15 = vsyncpa [#allocation6], 0 }
   0x5   :  { %16 = vsyncpa [#allocation4], 0 }
   0x6   :  { %18 = vsyncpa [#allocation4 + $0x1], 0  ;;  %s1246_s30 = smov 0   ;;  %s1248_s10 = smov 0  }
   0x7   :  { %s1250_s11 = smov 0   ;;  %s1252_s12 = smov 0  }
   0x8 LB: > { %s1267_s13 = sadd.s32 4294967295, %s1187_s12   ;;  %s794_s14 = sadd.s32 4294967294, %s1187_s12   ;;  %s1187_s12 = sphi %s1252_s12, %s1409_s12   ;;  %s1183_s11 = sphi %s1250_s11, %s1408_s11   ;;  %s1179_s10 = sphi %s1248_s10, %s1407_s10   ;;  %s1175_s30 = sphi %s1246_s30, %s1406_s30  }
   0x9   : > { %s1271_s15 = sadd.s32 1, %s1187_s12   ;;  %s225_s16 = sadd.s32 1, %s1183_s11 }
   0xa   : > { %s222_s17 = ssub.s32 %s1187_s12, %s1271_s15  ;;  %p235_p0 = scmp.ne.s32.totalorder %s1183_s11, %s1179_s10 }
   0xb   : > { %p223_p1 = scmp.eq.s32.totalorder %s222_s17, 0  ;;  %p236_p2 = scmp.eq.s32.totalorder %s1267_s13, 2 }
   0xc   : > { %p241_p3 = scmp.ne.s32.totalorder %s1179_s10, %s1175_s30  ;;  %p242_p4 = scmp.eq.s32.totalorder %s794_s14, 2 }
   0xd   : > { %s1282_s18 = scalar_select %p223_p1, %s1183_s11, %s225_s16  }
   0xe   : > { %p1284_p5 = por %p236_p2, %p235_p0  ;;  %p1288_p6 = por %p242_p4, %p241_p3 }
   0xf   : > { %1398 = sst [smem:[#allocation12_spill]] %s1282_s18  ;;  %p795_p7 = scmp.ge.s32.totalorder %s1187_s12, 1 }
  0x10   : > { %p249_p8 = scmp.lt.s32.totalorder %s1187_s12, 4  ;;  %p977_p9 = scmp.eq.s32.totalorder %s1267_s13, 0 }
  0x11   : > { %s1402_s5 = sld [smem:[#allocation14_spill]]  ;;  %s1189_s29 = smov [#allocation5]  }
  0x12   : > { %p1295_p10 = pnand %p795_p7, %p249_p8  ;;  %s1403_s3 = sld [smem:[#allocation13_spill]] }
  0x13   : > { %s285_s14 = sshll.u32 %s1189_s29, 4  ;;  %s1190_s16 = smov 64   ;;  %s286_s14 = int_to_ptr.vmem [resolvable:$true] %s285_s14 }
  0x14   : > { %p963_p11 = pneg %p1295_p10  ;;  %s1191_s17 = smov 4  }
  0x15   : > { %s1192_s22 = smov [#allocation2]  }
  0x16   : > { %p1309_p12 = pnand %p977_p9, %p963_p11  ;;  %s268_s23 = sshll.u32 %s1192_s22, 4  ;;  %s269_s23 = int_to_ptr.vmem [resolvable:$true] %s268_s23 }
  0x17   : > { %s283_s24 = sshll.u32 %s1402_s5, 4  ;;  %s1193_s5 = smov [#allocation7]   ;;  %s284_s24 = int_to_ptr.hbm [resolvable:$true] %s283_s24 }
  0x18   : > { %s266_s27 = sshll.u32 %s1403_s3, 4  ;;  %s300_s3 = sshll.u32 %s1393_s7, 4  ;;  %s267_s27 = int_to_ptr.hbm [resolvable:$true] %s266_s27  ;;  %s301_s3 = int_to_ptr.hbm [resolvable:$true] %s300_s3 }
  0x19   : > { %969 = dma.hbm_to_vmem [thread:$0]  (!%p1309_p12), %s284_s24, 1024, %s286_s14, [#allocation6], %s1190_s16, %s1190_s16, %s1191_s17  }
  0x1a   : > { %966 = dma.hbm_to_vmem [thread:$0]  (!%p1309_p12), %s267_s27, 1024, %s269_s23, [#allocation3], %s1190_s16, %s1190_s16, %s1191_s17  }
  0x1b   : > { %s302_s18 = sshll.u32 %s1193_s5, 4  ;;  %330 = sbr.rel (%p1295_p10) target bundleno = 613 (0x265), region = 56  ;;  %s303_s18 = int_to_ptr.vmem [resolvable:$true] %s302_s18 }
  0x1c   : > { %972 = dma.hbm_to_vmem [thread:$0]  (!%p1309_p12), %s301_s3, 1024, %s303_s18, [#allocation6], %s1190_s16, %s1190_s16, %s1191_s17  }
  0x20   : > { %1162 = dma.done.wait (%p977_p9), [#allocation3], 1024  }
  0x21   : > { %1164 = vsyncadd (%p977_p9), [#allocation3], 4294966272 }
  0x22   : > { %1166 = dma.done.wait (%p977_p9), [#allocation6], 2048  }
  0x23   : > { %1168 = vsyncadd (%p977_p9), [#allocation6], 4294965248  ;;  %s805_s5 = sshll.u32 %s1267_s13, 1  ;;  %v923_v0 = vld [vmem:[%s1387_s1 + $0x8] sm:$0xff]  ;;  %v931_v1 = vld [vmem:[#allocation2 + $0x38] sm:$0xff]  ;;  %vm412_vm0 = vcmask 261120  }
  0x24   : > { %p378_p13 = scmp.lt.s32.totalorder %s805_s5, 5  ;;  %422 = vmatpush.bf16.msra.mxu0 %v923_v0  ;;  %v922_v2 = vld [vmem:[%s1387_s1] sm:$0xff]  ;;  %499 = vmatpush.bf16.msra.mxu1 %v931_v1  ;;  %v930_v3 = vld [vmem:[#allocation2 + $0x30] sm:$0xff]  ;;  %v929_v5 = vld [vmem:[#allocation2 + $0x28] sm:$0xff]  ;;  %s948_s24 = sshll.u32 %s1267_s13, 4 }
  0x25   : > { %v928_v6 = vld [vmem:[#allocation2 + $0x20] sm:$0xff]  ;;  %v927_v7 = vld [vmem:[#allocation2 + $0x18] sm:$0xff]  ;;  %v926_v8 = vld [vmem:[#allocation2 + $0x10] sm:$0xff]  ;;  %s697_s29 = scalar_lea.hbm %s1395_s9, %s948_s24 }
  0x26   : > { %s1411_s5 = smov (!%p378_p13, %s805_s5), 5  ;;  %v925_v9 = vld [vmem:[#allocation2 + $0x8] sm:$0xff]  ;;  %v924_v10 = vld [vmem:[#allocation2] sm:$0xff]  ;;  %v939_v11 = vld [vmem:[#allocation5 + $0x38] sm:$0xff]  ;;  %s700_s17 = sshll.u32 %s697_s29, 4  ;;  %s701_s17 = int_to_ptr.hbm [resolvable:$true] %s700_s17 }
  0x27   : > { %s806_s3 = sshll.u32 %s1411_s5, 2  ;;  %584 = vmatpush.bf16.msra.mxu2 %v939_v11  ;;  %v938_v12 = vld [vmem:[#allocation5 + $0x30] sm:$0xff]  ;;  %v937_v13 = vld [vmem:[#allocation5 + $0x28] sm:$0xff]  ;;  %v936_v14 = vld [vmem:[#allocation5 + $0x20] sm:$0xff]  ;;  %s374_s5 = sand.u32 1, %s1179_s10  }
  0x28   : > { %s381_s14 = scalar_lea.vmem %s1386_s0, %s806_s3  ;;  %423 = vmatpush.bf16.msra.mxu0 %v922_v2  ;;  %500 = vmatpush.bf16.msra.mxu1 %v930_v3  ;;  %v1023_v16 = vld [vmem:[%s1388_s2] ss:$0 sm:$0xff]  ;;  %v935_v21 = vld [vmem:[#allocation5 + $0x18] sm:$0xff]  ;;  %v934_v22 = vld [vmem:[#allocation5 + $0x10] sm:$0xff]  ;;  %s804_s3 = sshll.u32 %s374_s5, 4 }
  0x29   : > { %v921_v4 = vld [vmem:[%s381_s14] sm:$0xff]  ;;  %v933_v23 = vld [vmem:[#allocation5 + $0x8] sm:$0xff]  ;;  %v947_v25 = vld [vmem:[#allocation7 + $0x38] sm:$0xff]  ;;  %s376_s14 = scalar_lea.vmem [#allocation8], %s804_s3  ;;  %s686_s22 = scalar_lea.sflag [#allocation4], %s374_s5 }
  0x2a   : > { %v932_v24 = vld [vmem:[#allocation5] sm:$0xff]  ;;  %669 = vmatpush.bf16.msra.mxu3 %v947_v25  ;;  %v946_v26 = vld [vmem:[#allocation7 + $0x30] sm:$0xff]  ;;  %v945_v27 = vld [vmem:[#allocation7 + $0x28] sm:$0xff]  ;;  %s698_s16 = sshll.u32 %s376_s14, 4  ;;  %s1131_s23 = sshra.s32 %s701_s17, 4  ;;  %s699_s16 = int_to_ptr.vmem [resolvable:$true] %s698_s16  ;;  %s1132_s23 = int_to_ptr.hbm [resolvable:$true] %s1131_s23 }
  0x2b   : > { %819 = vmatmul.msk.bf16.vlgmr.msra.gmra.mxu0 %vm412_vm0, %v921_v4  ;;  %585 = vmatpush.bf16.msra.mxu2 %v938_v12  ;;  %v944_v28 = vld [vmem:[#allocation7 + $0x20] sm:$0xff]  ;;  %v943_v37 = vld [vmem:[#allocation7 + $0x18] sm:$0xff]  ;;  %v942_v38 = vld [vmem:[#allocation7 + $0x10] sm:$0xff]  ;;  %s1133_s13 = scalar_lea.hbm %s1132_s23, 16  ;;  %s1137_s3 = scalar_lea.hbm %s1395_s9, 48 }
  0x2c   : > { %501 = vmatpush.bf16.msra.mxu1 %v929_v5  ;;  %v1024_v30 = vld [vmem:[%s1390_s4] ss:$0 sm:$0xff]  ;;  %v941_v39 = vld [vmem:[#allocation7 + $0x8] sm:$0xff]  ;;  %p1134_p0 = scmp.ne.s32.totalorder %s1132_s23, %s1133_s13  ;;  %p1138_p3 = scmp.lt.s32.totalorder %s1132_s23, %s1395_s9 }
  0x2d   : > { %v940_v40 = vld [vmem:[#allocation7] sm:$0xff]  ;;  %p1139_p4 = scmp.lt.s32.totalorder %s1137_s3, %s1133_s13 }
  0x2e   : > { %670 = vmatpush.bf16.msra.mxu3 %v946_v26  ;;  %v1025_v42 = vld [vmem:[%s1392_s6] ss:$0 sm:$0xff]  ;;  %p1135_p1 = pnand %p1134_p0, %p1284_p5 }
  0x2f   : > { %586 = vmatpush.bf16.msra.mxu2 %v937_v13  ;;  %v1026_v49 = vld [vmem:[%s1394_s8] ss:$0 sm:$0xff]  ;;  %p1140_p7 = por %p1139_p4, %p1138_p3 }
  0x30   : > { %502 = vmatpush.bf16.msra.mxu1 %v928_v6  ;;  %p1136_p2 = pneg %p1135_p1 }
  0x32   : > { %671 = vmatpush.bf16.msra.mxu3 %v945_v27  ;;  %p1141_p8 = pnand %p1140_p7, %p1136_p2 }
  0x33   : > { %587 = vmatpush.bf16.msra.mxu2 %v936_v14 }
  0x34   : > { %503 = vmatpush.bf16.msra.mxu1 %v927_v7 }
  0x36   : > { %672 = vmatpush.bf16.msra.mxu3 %v944_v28 }
  0x37   : > { %588 = vmatpush.bf16.msra.mxu2 %v935_v21 }
  0x38   : > { %504 = vmatpush.bf16.msra.mxu1 %v926_v8 }
  0x3a   : > { %673 = vmatpush.bf16.msra.mxu3 %v943_v37 }
  0x3b   : > { %589 = vmatpush.bf16.msra.mxu2 %v934_v22 }
  0x3c   : > { %505 = vmatpush.bf16.msra.mxu1 %v925_v9 }
  0x3e   : > { %674 = vmatpush.bf16.msra.mxu3 %v942_v38 }
  0x3f   : > { %590 = vmatpush.bf16.msra.mxu2 %v933_v23 }
  0x40   : > { %506 = vmatpush.bf16.msra.mxu1 %v924_v10 }
  0x42   : > { %675 = vmatpush.bf16.msra.mxu3 %v941_v39 }
  0x43   : > { %591 = vmatpush.bf16.msra.mxu2 %v932_v24 }
  0x46   : > { %676 = vmatpush.bf16.msra.mxu3 %v940_v40 }
  0xa8   : > { %v425_v15 = vpop.f32.mrf.mxu0 }
  0xa9   : > { %v426_v18 = vadd.f32 %v1023_v16, %v425_v15 }
  0xb0   : > { %v427_v17 = vpop.f32.mrf.mxu0 }
  0xb1   : > { %v428_v19 = vadd.f32 %v1023_v16, %v427_v17 }
  0xb3   : > { %v430_v20 = vpack.c.bf16 %v428_v19, %v426_v18 }
  0xb5   : > { %507 = vmatmul.bf16.vlgmr.msra.gmra.mxu1 %v430_v20 }
 0x132   : > { %v508_v29 = vpop.f32.mrf.mxu1 }
 0x133   : > { %v509_v31 = vadd.f32 %v1024_v30, %v508_v29 }
 0x135   : > { %v513_v34 = vmax.f32 %v509_v31, 0.0 }
 0x13a   : > { %v510_v32 = vpop.f32.mrf.mxu1 }
 0x13b   : > { %v511_v33 = vadd.f32 %v1024_v30, %v510_v32 }
 0x13d   : > { %v514_v35 = vmax.f32 %v511_v33, 0.0 }
 0x13f   : > { %v515_v36 = vpack.c.bf16 %v514_v35, %v513_v34 }
 0x141   : > { %592 = vmatmul.bf16.vlgmr.msra.gmra.mxu2 %v515_v36 }
 0x1c4   : > { %v593_v41 = vpop.f32.mrf.mxu2 }
 0x1c5   : > { %v594_v43 = vadd.f32 %v1025_v42, %v593_v41 }
 0x1c7   : > { %v598_v46 = vmax.f32 %v594_v43, 0.0 }
 0x1cc   : > { %v595_v44 = vpop.f32.mrf.mxu2 }
 0x1cd   : > { %v596_v45 = vadd.f32 %v1025_v42, %v595_v44 }
 0x1cf   : > { %v599_v47 = vmax.f32 %v596_v45, 0.0 }
 0x1d1   : > { %v600_v48 = vpack.c.bf16 %v599_v47, %v598_v46 }
 0x1d3   : > { %677 = vmatmul.bf16.vlgmr.msra.gmra.mxu3 %v600_v48 }
 0x256   : > { %v678_v50 = vpop.f32.mrf.mxu3 }
 0x257   : > { %v679_v51 = vadd.f32 %v1026_v49, %v678_v50 }
 0x259   : > { %683 = vst [vmem:[%s376_s14] sm:$0xff] %v679_v51 }
 0x25e   : > { %v680_v52 = vpop.f32.mrf.mxu3 }
 0x25f   : > { %v681_v53 = vadd.f32 %v1026_v49, %v680_v52 }
 0x261   : > { %684 = vst [vmem:[%s376_s14 + $0x8] sm:$0xff] %v681_v53 }
 0x262   : > { %1144 = shalt.err (!%p1141_p8)
}
 0x263   : > { %s1194_s5 = smov 128   ;;  %s1195_s24 = smov 8  }
 0x264   : > { %961 = dma.vmem_to_hbm [thread:$0]  (%p1284_p5), %s699_s16, 256, %s701_s17, %s686_s22, %s1194_s5, %s1194_s5, %s1195_s24  }
 0x265 PF: > { %p983_p9 = scmp.ge.s32.totalorder %s1187_s12, 2  ;;  %s715_s27 = sand.u32 1, %s1175_s30  }
 0x266   : > { %s716_s28 = scalar_lea.sflag [#allocation4], %s715_s27 }
 0x267   : > { %p974_p10 = pnand %p983_p9, %p1288_p6 }
 0x269   : > { %p975_p11 = pneg %p974_p10 }
 0x26b   : > { %1170 = dma.done.wait (%p975_p11), %s716_s28, 256  }
 0x26c   : > { %1172 = vsyncadd (%p975_p11), %s716_s28, 4294967040  ;;  %s1405_s29 = sld [smem:[#allocation12_spill]]  ;;  %p21_p12 = scmp.ge.s32.totalorder %s1271_s15, 5  }
 0x26d   : > { %s1406_s30 = smov %s1179_s10  ;;  %s1407_s10 = smov %s1183_s11 }
 0x26e   : > { %s1409_s12 = smov %s1271_s15  ;;  %23 = sbr.rel (!%p21_p12) target bundleno = 8 (0x8), region = 104 }
 0x272   : > { %s1408_s11 = smov %s1405_s29 }
 0x273   :  { %722 = vsyncpa [#allocation3], 1 }
 0x274   :  { %724 = vsyncpa [#allocation3 + $0x1], 1 }
 0x275   :  { %725 = vsyncpa [#allocation6], 1 }
 0x276   :  { %726 = vsyncpa [#allocation4], 1 }
 0x277   :  { %728 = vsyncpa [#allocation4 + $0x1], 1 }

</bundles_post_ra>
